<compile_context>
chip_gen: v6e
topology: v6e:2x2x1
jax: 0.10.0
libtpu: 0.0.40
codegen_flags: <defaults>
</compile_context>

<pallas_src>
import functools
import math

import jax
import jax.numpy as jnp
from jax import lax
from jax.experimental import pallas as pl
from jax.experimental.pallas import tpu as pltpu


def _flash_sdpa_kernel(seed_ref, q_ref, k_ref, v_ref, o_ref,
                       m_sc, l_sc, acc_sc, *, scale, dropout_p):
    ki = pl.program_id(2)

    @pl.when(ki == 0)
    def _():
        m_sc[...] = jnp.full(m_sc.shape, -jnp.inf, dtype=jnp.float32)
        l_sc[...] = jnp.zeros(l_sc.shape, dtype=jnp.float32)
        acc_sc[...] = jnp.zeros(acc_sc.shape, dtype=jnp.float32)

    # scores: (G, tq, tk) — contract on the last dim of both operands (no k.T),
    # native-dtype inputs, f32 accumulation on the MXU.
    s = lax.dot_general(
        q_ref[...], k_ref[...],
        dimension_numbers=(((2,), (2,)), ((0,), (0,))),
        preferred_element_type=jnp.float32,
    ) * scale

    m_prev = m_sc[...]
    m_new = jnp.maximum(m_prev, jnp.max(s, axis=-1, keepdims=True))
    a = jnp.exp(m_prev - m_new)            # correction factor for old stats
    p = jnp.exp(s - m_new)                 # (G, tq, tk) f32 unnormalized probs

    l_sc[...] = a * l_sc[...] + jnp.sum(p, axis=-1, keepdims=True)
    m_sc[...] = m_new

    if dropout_p > 0.0:
        # TODO(synk): training-mode dropout uses the TPU hardware PRNG (same
        # distribution, not bit-identical to PyTorch's RNG stream).
        pltpu.prng_seed(
            seed_ref[0]
            + pl.program_id(0) * (pl.num_programs(1) * pl.num_programs(2))
            + pl.program_id(1) * pl.num_programs(2)
            + ki)
        bits = pltpu.bitcast(pltpu.prng_random_bits(p.shape), jnp.uint32)
        thresh = jnp.uint32(min(int(dropout_p * float(2 ** 32)), 2 ** 32 - 1))
        keep_scale = 1.0 / (1.0 - dropout_p)
        # drop unnormalized probs; the denominator l uses the un-dropped sum,
        # which matches dropout applied to the normalized attention weights.
        p = jnp.where(bits >= thresh, p * keep_scale, 0.0)

    pv = lax.dot_general(
        p.astype(v_ref.dtype), v_ref[...],
        dimension_numbers=(((2,), (1,)), ((0,), (0,))),
        preferred_element_type=jnp.float32,
    )
    acc_sc[...] = a * acc_sc[...] + pv

    @pl.when(ki == pl.num_programs(2) - 1)
    def _():
        inv_l = pl.reciprocal(l_sc[...], approx=True)   # EUP slot, ~free
        o_ref[...] = (acc_sc[...] * inv_l).astype(o_ref.dtype)


def _pick_tile(L, candidates=(256, 128)):
    # 256 rows matches the v6e/v7x 256-wide MXU; 128 as fallback (v5e-friendly);
    # small / odd L falls back to the full sequence as a single tile.
    for t in candidates:
        if L % t == 0:
            return t
    return L


def _pick_heads_per_step(N, tq, tk, D, in_itemsize, out_itemsize,
                         budget_bytes=6 * 1024 * 1024):
    # Per-head per-step VMEM: q/k/v blocks (double-buffered by the pipeline),
    # the output block (double-buffered), plus the f32 acc/m/l scratch.
    # 6 MiB block budget keeps us well inside v7x's 64 MiB physical VMEM.
    per_head = (2 * (tq + 2 * tk) * D * in_itemsize
                + 2 * tq * D * out_itemsize
                + tq * D * 4 + 2 * tq * 4)
    g, cand = 1, 2
    while cand <= N and N % cand == 0 and cand * per_head <= budget_bytes:
        g, cand = cand, cand * 2
    return g, per_head


def fusion_module_forward(q, k, v, *, dropout_p=0.1, training=False, rng_seed=0):
    """JAX/Pallas equivalent of FusionModule.forward (SDPA, no mask, not causal)."""
    assert q.shape == k.shape == v.shape
    B, H, L, D = q.shape
    scale = 1.0 / math.sqrt(D)
    p = float(dropout_p) if training else 0.0

    N = B * H
    qf = q.reshape(N, L, D)
    kf = k.reshape(N, L, D)
    vf = v.reshape(N, L, D)

    tq = _pick_tile(L)
    tk = _pick_tile(L)
    G, per_head = _pick_heads_per_step(N, tq, tk, D,
                                       q.dtype.itemsize, q.dtype.itemsize)

    grid = (N // G, L // tq, L // tk)
    vmem_limit = int(min(48 * 1024 * 1024,
                         max(32 * 1024 * 1024, 2 * G * per_head)))

    kernel = functools.partial(_flash_sdpa_kernel, scale=scale, dropout_p=p)
    seed = jnp.asarray([rng_seed], dtype=jnp.int32)

    out = pl.pallas_call(
        kernel,
        out_shape=jax.ShapeDtypeStruct((N, L, D), q.dtype),
        grid_spec=pltpu.PrefetchScalarGridSpec(
            num_scalar_prefetch=1,          # dropout seed in SMEM
            grid=grid,
            in_specs=[
                pl.BlockSpec((G, tq, D), lambda n, qi, ki, seed_ref: (n, qi, 0)),
                pl.BlockSpec((G, tk, D), lambda n, qi, ki, seed_ref: (n, ki, 0)),
                pl.BlockSpec((G, tk, D), lambda n, qi, ki, seed_ref: (n, ki, 0)),
            ],
            out_specs=pl.BlockSpec((G, tq, D), lambda n, qi, ki, seed_ref: (n, qi, 0)),
            scratch_shapes=[
                pltpu.VMEM((G, tq, 1), jnp.float32),   # m (running max)
                pltpu.VMEM((G, tq, 1), jnp.float32),   # l (running denom)
                pltpu.VMEM((G, tq, D), jnp.float32),   # acc
            ],
        ),
        compiler_params=pltpu.CompilerParams(
            dimension_semantics=("parallel", "parallel", "arbitrary"),
            vmem_limit_bytes=vmem_limit,
        ),
    )(seed, qf, kf, vf)

    return out.reshape(B, H, L, D)


def _reference_sdpa(q, k, v):
    D = q.shape[-1]
    s = jnp.einsum("bhqd,bhkd->bhqk", q.astype(jnp.float32),
                   k.astype(jnp.float32)) / math.sqrt(D)
    a = jax.nn.softmax(s, axis=-1)
    return jnp.einsum("bhqk,bhkd->bhqd", a, v.astype(jnp.float32)).astype(q.dtype)


if __name__ == "__main__":
    key = jax.random.PRNGKey(0)

    # Small shape matching the module's SDPA convention (..., L, E).
    B, H, L, D = 2, 4, 8, 32
    kq, kk, kv, krest = jax.random.split(key, 4)
    q = jax.random.normal(kq, (B, H, L, D), dtype=jnp.float32)
    k = jax.random.normal(kk, (B, H, L, D), dtype=jnp.float32)
    v = jax.random.normal(kv, (B, H, L, D), dtype=jnp.float32)

    # Eval path (module.eval() -> dropout_p = 0.0).
    out = fusion_module_forward(q, k, v, dropout_p=0.1, training=False)
    out = jax.block_until_ready(out)
    ref = _reference_sdpa(q, k, v)
    assert jnp.allclose(out, ref, atol=2e-3, rtol=2e-3), "mismatch (small shape)"

    # Second shape exercising the tiled online-softmax path (2x2 q/k tiles).
    B2, H2, L2, D2 = 1, 2, 512, 64
    kq2, kk2, kv2 = jax.random.split(krest, 3)
    q2 = jax.random.normal(kq2, (B2, H2, L2, D2), dtype=jnp.float32)
    k2 = jax.random.normal(kk2, (B2, H2, L2, D2), dtype=jnp.float32)
    v2 = jax.random.normal(kv2, (B2, H2, L2, D2), dtype=jnp.float32)

    out2 = fusion_module_forward(q2, k2, v2, dropout_p=0.1, training=False)
    out2 = jax.block_until_ready(out2)
    ref2 = _reference_sdpa(q2, k2, v2)
    assert jnp.allclose(out2, ref2, atol=2e-3, rtol=2e-3), "mismatch (tiled shape)"

    print("KERNEL_OK")
</pallas_src>

<mosaic_0001>
module attributes {stable_mosaic.version = 11 : i64} {
  func.func @_flash_sdpa_kernel(%arg0: i32, %arg1: i32, %arg2: i32, %arg3: memref<1xi32, #tpu.memory_space<smem>>, %arg4: memref<8x8x32xf32, #tpu.memory_space<vmem>>, %arg5: memref<8x8x32xf32, #tpu.memory_space<vmem>>, %arg6: memref<8x8x32xf32, #tpu.memory_space<vmem>>, %arg7: memref<8x8x32xf32, #tpu.memory_space<vmem>>, %arg8: memref<8x8x1xf32, #tpu.memory_space<vmem>>, %arg9: memref<8x8x1xf32, #tpu.memory_space<vmem>>, %arg10: memref<8x8x32xf32, #tpu.memory_space<vmem>>) attributes {dimension_semantics = [#tpu.dimension_semantics<parallel>, #tpu.dimension_semantics<parallel>, #tpu.dimension_semantics<arbitrary>], iteration_bounds = array<i64: 1, 1, 1>, scalar_prefetch = 1 : i64, scratch_operands = 3 : i64, tpu.core_type = #tpu.core_type<tc>, window_params = [{transform_indices = @transform_0, window_bounds = array<i64: 8, 8, 32>}, {transform_indices = @transform_1, window_bounds = array<i64: 8, 8, 32>}, {transform_indices = @transform_2, window_bounds = array<i64: 8, 8, 32>}, {transform_indices = @transform_3, window_bounds = array<i64: 8, 8, 32>}]} {
    %c0_i32 = arith.constant 0 : i32
    %0 = arith.cmpi eq, %arg2, %c0_i32 : i32
    %1 = arith.extui %0 : i1 to i32
    %c0_i32_0 = arith.constant 0 : i32
    %2 = arith.cmpi ne, %1, %c0_i32_0 : i32
    scf.if %2 {
      %cst_33 = arith.constant 0xFF800000 : f32
      %34 = vector.broadcast %cst_33 : f32 to vector<8x8x1xf32>
      %c0_34 = arith.constant 0 : index
      %c0_35 = arith.constant 0 : index
      %c0_36 = arith.constant 0 : index
      %35 = vector.load %arg8[%c0_34, %c0_35, %c0_36] : memref<8x8x1xf32, #tpu.memory_space<vmem>>, vector<8x8x1xf32>
      tpu.vector_store %arg8[%c0_34, %c0_35, %c0_36], %34 {strides = array<i32>} : memref<8x8x1xf32, #tpu.memory_space<vmem>>, vector<8x8x1xf32>,
      %cst_37 = arith.constant 0.000000e+00 : f32
      %36 = vector.broadcast %cst_37 : f32 to vector<8x8x1xf32>
      %c0_38 = arith.constant 0 : index
      %c0_39 = arith.constant 0 : index
      %c0_40 = arith.constant 0 : index
      %37 = vector.load %arg9[%c0_38, %c0_39, %c0_40] : memref<8x8x1xf32, #tpu.memory_space<vmem>>, vector<8x8x1xf32>
      tpu.vector_store %arg9[%c0_38, %c0_39, %c0_40], %36 {strides = array<i32>} : memref<8x8x1xf32, #tpu.memory_space<vmem>>, vector<8x8x1xf32>,
      %cst_41 = arith.constant 0.000000e+00 : f32
      %38 = vector.broadcast %cst_41 : f32 to vector<8x8x32xf32>
      %c0_42 = arith.constant 0 : index
      %c0_43 = arith.constant 0 : index
      %c0_44 = arith.constant 0 : index
      %39 = vector.load %arg10[%c0_42, %c0_43, %c0_44] : memref<8x8x32xf32, #tpu.memory_space<vmem>>, vector<8x8x32xf32>
      tpu.vector_store %arg10[%c0_42, %c0_43, %c0_44], %38 {strides = array<i32>} : memref<8x8x32xf32, #tpu.memory_space<vmem>>, vector<8x8x32xf32>,
    } else {
    }
    %c0 = arith.constant 0 : index
    %c0_1 = arith.constant 0 : index
    %c0_2 = arith.constant 0 : index
    %3 = vector.load %arg4[%c0, %c0_1, %c0_2] : memref<8x8x32xf32, #tpu.memory_space<vmem>>, vector<8x8x32xf32>
    %c0_3 = arith.constant 0 : index
    %c0_4 = arith.constant 0 : index
    %c0_5 = arith.constant 0 : index
    %4 = vector.load %arg5[%c0_3, %c0_4, %c0_5] : memref<8x8x32xf32, #tpu.memory_space<vmem>>, vector<8x8x32xf32>
    %cst = arith.constant dense<0.000000e+00> : vector<8x8x8xf32>
    %5 = tpu.matmul %3, %4, %cst {dimension_numbers = #tpu.dot_dimension_numbers<[2], [2], [1], [1], [0, 0, 0, 1, 1, 1], [0], [0]>} : vector<8x8x32xf32>, vector<8x8x32xf32>, vector<8x8x8xf32> -> vector<8x8x8xf32>
    %cst_6 = arith.constant 0.176776692 : f32
    %6 = vector.broadcast %cst_6 : f32 to vector<8x8x8xf32>
    %7 = arith.mulf %5, %6 : vector<8x8x8xf32>
    %c0_7 = arith.constant 0 : index
    %c0_8 = arith.constant 0 : index
    %c0_9 = arith.constant 0 : index
    %8 = vector.load %arg8[%c0_7, %c0_8, %c0_9] : memref<8x8x1xf32, #tpu.memory_space<vmem>>, vector<8x8x1xf32>
    %cst_10 = arith.constant dense<0xFF800000> : vector<8x8xf32>
    %9 = vector.multi_reduction <maximumf>, %7, %cst_10 [2] : vector<8x8x8xf32> to vector<8x8xf32>
    %10 = vector.shape_cast %9 : vector<8x8xf32> to vector<8x8x1xf32>
    %11 = arith.maximumf %8, %10 : vector<8x8x1xf32>
    %12 = arith.subf %8, %11 : vector<8x8x1xf32>
    %13 = math.exp %12 : vector<8x8x1xf32>
    %14 = vector.broadcast %11 : vector<8x8x1xf32> to vector<8x8x8xf32>
    %15 = arith.subf %7, %14 : vector<8x8x8xf32>
    %16 = math.exp %15 : vector<8x8x8xf32>
    %c0_11 = arith.constant 0 : index
    %c0_12 = arith.constant 0 : index
    %c0_13 = arith.constant 0 : index
    %17 = vector.load %arg9[%c0_11, %c0_12, %c0_13] : memref<8x8x1xf32, #tpu.memory_space<vmem>>, vector<8x8x1xf32>
    %18 = arith.mulf %13, %17 : vector<8x8x1xf32>
    %cst_14 = arith.constant dense<0.000000e+00> : vector<8x8xf32>
    %19 = vector.multi_reduction <add>, %16, %cst_14 [2] : vector<8x8x8xf32> to vector<8x8xf32>
    %20 = vector.shape_cast %19 : vector<8x8xf32> to vector<8x8x1xf32>
    %21 = arith.addf %18, %20 : vector<8x8x1xf32>
    %c0_15 = arith.constant 0 : index
    %c0_16 = arith.constant 0 : index
    %c0_17 = arith.constant 0 : index
    %22 = vector.load %arg9[%c0_15, %c0_16, %c0_17] : memref<8x8x1xf32, #tpu.memory_space<vmem>>, vector<8x8x1xf32>
    tpu.vector_store %arg9[%c0_15, %c0_16, %c0_17], %21 {strides = array<i32>} : memref<8x8x1xf32, #tpu.memory_space<vmem>>, vector<8x8x1xf32>,
    %c0_18 = arith.constant 0 : index
    %c0_19 = arith.constant 0 : index
    %c0_20 = arith.constant 0 : index
    %23 = vector.load %arg8[%c0_18, %c0_19, %c0_20] : memref<8x8x1xf32, #tpu.memory_space<vmem>>, vector<8x8x1xf32>
    tpu.vector_store %arg8[%c0_18, %c0_19, %c0_20], %11 {strides = array<i32>} : memref<8x8x1xf32, #tpu.memory_space<vmem>>, vector<8x8x1xf32>,
    %c0_21 = arith.constant 0 : index
    %c0_22 = arith.constant 0 : index
    %c0_23 = arith.constant 0 : index
    %24 = vector.load %arg6[%c0_21, %c0_22, %c0_23] : memref<8x8x32xf32, #tpu.memory_space<vmem>>, vector<8x8x32xf32>
    %cst_24 = arith.constant dense<0.000000e+00> : vector<8x8x32xf32>
    %25 = tpu.matmul %16, %24, %cst_24 {dimension_numbers = #tpu.dot_dimension_numbers<[2], [1], [1], [2], [0, 0, 0, 1, 1, 2], [0], [0]>} : vector<8x8x8xf32>, vector<8x8x32xf32>, vector<8x8x32xf32> -> vector<8x8x32xf32>
    %c0_25 = arith.constant 0 : index
    %c0_26 = arith.constant 0 : index
    %c0_27 = arith.constant 0 : index
    %26 = vector.load %arg10[%c0_25, %c0_26, %c0_27] : memref<8x8x32xf32, #tpu.memory_space<vmem>>, vector<8x8x32xf32>
    %27 = vector.broadcast %13 : vector<8x8x1xf32> to vector<8x8x32xf32>
    %28 = arith.mulf %27, %26 : vector<8x8x32xf32>
    %29 = arith.addf %28, %25 : vector<8x8x32xf32>
    %c0_28 = arith.constant 0 : index
    %c0_29 = arith.constant 0 : index
    %c0_30 = arith.constant 0 : index
    %30 = vector.load %arg10[%c0_28, %c0_29, %c0_30] : memref<8x8x32xf32, #tpu.memory_space<vmem>>, vector<8x8x32xf32>
    tpu.vector_store %arg10[%c0_28, %c0_29, %c0_30], %29 {strides = array<i32>} : memref<8x8x32xf32, #tpu.memory_space<vmem>>, vector<8x8x32xf32>,
    %c0_i32_31 = arith.constant 0 : i32
    %31 = arith.cmpi eq, %arg2, %c0_i32_31 : i32
    %32 = arith.extui %31 : i1 to i32
    %c0_i32_32 = arith.constant 0 : i32
    %33 = arith.cmpi ne, %32, %c0_i32_32 : i32
    scf.if %33 {
      %c0_33 = arith.constant 0 : index
      %c0_34 = arith.constant 0 : index
      %c0_35 = arith.constant 0 : index
      %34 = vector.load %arg9[%c0_33, %c0_34, %c0_35] : memref<8x8x1xf32, #tpu.memory_space<vmem>>, vector<8x8x1xf32>
      %35 = tpu.reciprocal %34 {approx = true} : vector<8x8x1xf32> -> vector<8x8x1xf32>
      %c0_36 = arith.constant 0 : index
      %c0_37 = arith.constant 0 : index
      %c0_38 = arith.constant 0 : index
      %36 = vector.load %arg10[%c0_36, %c0_37, %c0_38] : memref<8x8x32xf32, #tpu.memory_space<vmem>>, vector<8x8x32xf32>
      %37 = vector.broadcast %35 : vector<8x8x1xf32> to vector<8x8x32xf32>
      %38 = arith.mulf %36, %37 : vector<8x8x32xf32>
      %c0_39 = arith.constant 0 : index
      %c0_40 = arith.constant 0 : index
      %c0_41 = arith.constant 0 : index
      %39 = vector.load %arg7[%c0_39, %c0_40, %c0_41] : memref<8x8x32xf32, #tpu.memory_space<vmem>>, vector<8x8x32xf32>
      tpu.vector_store %arg7[%c0_39, %c0_40, %c0_41], %38 {strides = array<i32>} : memref<8x8x32xf32, #tpu.memory_space<vmem>>, vector<8x8x32xf32>,
    } else {
    }
    return
  }
  func.func @transform_0(%arg0: i32, %arg1: i32, %arg2: i32, %arg3: memref<1xi32, #tpu.memory_space<smem>>) -> (i32, i32, i32) {
    %c0_i32 = arith.constant 0 : i32
    %c0_i32_0 = arith.constant 0 : i32
    return %arg0, %arg1, %c0_i32 : i32, i32, i32
  }
  func.func @transform_1(%arg0: i32, %arg1: i32, %arg2: i32, %arg3: memref<1xi32, #tpu.memory_space<smem>>) -> (i32, i32, i32) {
    %c0_i32 = arith.constant 0 : i32
    %c0_i32_0 = arith.constant 0 : i32
    return %arg0, %arg2, %c0_i32 : i32, i32, i32
  }
  func.func @transform_2(%arg0: i32, %arg1: i32, %arg2: i32, %arg3: memref<1xi32, #tpu.memory_space<smem>>) -> (i32, i32, i32) {
    %c0_i32 = arith.constant 0 : i32
    %c0_i32_0 = arith.constant 0 : i32
    return %arg0, %arg2, %c0_i32 : i32, i32, i32
  }
  func.func @transform_3(%arg0: i32, %arg1: i32, %arg2: i32, %arg3: memref<1xi32, #tpu.memory_space<smem>>) -> (i32, i32, i32) {
    %c0_i32 = arith.constant 0 : i32
    %c0_i32_0 = arith.constant 0 : i32
    return %arg0, %arg1, %c0_i32 : i32, i32, i32
  }
}

</mosaic_0001>

<bundles_post_ra>
// kernel: tpu_custom_call.1
= control target key start
LH: loop header
LB: loop body
LE: loop exit
PB: predicated region body
PF: predicated region fallthrough
CT: control target
= control target key end

     0   :  { %10 = vsyncpa [#allocation8], 0  ;;  %s2309_s0 = inlined_call_operand.<no memory space> [shape: s32[1], index: 0, kind: input, shape index: {}]   ;;  %s2310_s1 = inlined_call_operand.hbm [shape: f32[8,8,32], index: 1, kind: input, shape index: {}]   ;;  %s2311_s2 = inlined_call_operand.hbm [shape: f32[8,8,32], index: 2, kind: input, shape index: {}]   ;;  %s2312_s3 = inlined_call_operand.hbm [shape: f32[8,8,32], index: 3, kind: input, shape index: {}]   ;;  %s2313_s4 = inlined_call_operand.hbm [shape: f32[8,8,32], index: 4, kind: output, shape index: {}]  }
   0x1   :  { %11 = vsyncpa [#allocation11], 0 }
   0x2   :  { %12 = vsyncpa [#allocation9], 0  ;;  %s1962_s15 = smov [#allocation10]   ;;  %s1963_s17 = smov [#allocation7]  }
   0x3   :  { %s30_s16 = sshll.u32 %s1962_s15, 4  ;;  %s18_s18 = sshll.u32 %s1963_s17, 4  ;;  %s31_s16 = int_to_ptr.vmem [resolvable:$true] %s30_s16  ;;  %s19_s18 = int_to_ptr.vmem [resolvable:$true] %s18_s18 }
   0x4   :  { %s1884_s0 = scalar_lea.vmem %s31_s16, 1024  ;;  %p1889_p1 = scmp.lt.s32.totalorder %s31_s16, %s31_s16 }
   0x5   :  { %p1885_p0 = scmp.ne.s32.totalorder %s31_s16, %s1884_s0  ;;  %p1890_p2 = scmp.lt.s32.totalorder %s1884_s0, %s1884_s0 }
   0x7   :  { %p1891_p3 = por %p1890_p2, %p1889_p1 }
   0x9   :  { %p1892_p4 = pnand %p1891_p3, %p1885_p0 }
   0xb   :  { %1895 = shalt.err (!%p1892_p4)
}
   0xc   :  { %s1964_s19 = smov 128   ;;  %s1965_s20 = smov 8  }
   0xd   :  { %36 = dma.hbm_to_vmem [thread:$0]  %s2311_s2, 1024, %s31_s16, [#allocation11], %s1964_s19, %s1964_s19, %s1965_s20  }
   0xe   :  { %s1904_s23 = scalar_lea.vmem %s19_s18, 1024  ;;  %p1909_p6 = scmp.lt.s32.totalorder %s19_s18, %s19_s18 }
   0xf   :  { %p1905_p5 = scmp.ne.s32.totalorder %s19_s18, %s1904_s23  ;;  %p1910_p7 = scmp.lt.s32.totalorder %s1904_s23, %s1904_s23 }
  0x11   :  { %p1911_p8 = por %p1910_p7, %p1909_p6 }
  0x13   :  { %p1912_p9 = pnand %p1911_p8, %p1905_p5 }
  0x15   :  { %1915 = shalt.err (!%p1912_p9)
}
  0x16   :  { %24 = dma.hbm_to_vmem [thread:$0]  %s2310_s1, 1024, %s19_s18, [#allocation8], %s1964_s19, %s1964_s19, %s1965_s20  }
  0x17   :  { %s1966_s26 = smov [#allocation12]  }
  0x18   :  { %s42_s27 = sshll.u32 %s1966_s26, 4  ;;  %s43_s27 = int_to_ptr.vmem [resolvable:$true] %s42_s27 }
  0x19   :  { %s1924_s28 = scalar_lea.vmem %s43_s27, 1024  ;;  %p1929_p11 = scmp.lt.s32.totalorder %s43_s27, %s43_s27 }
  0x1a   :  { %p1925_p10 = scmp.ne.s32.totalorder %s43_s27, %s1924_s28  ;;  %p1930_p12 = scmp.lt.s32.totalorder %s1924_s28, %s1924_s28 }
  0x1c   :  { %p1931_p13 = por %p1930_p12, %p1929_p11 }
  0x1e   :  { %p1932_p0 = pnand %p1931_p13, %p1925_p10 }
  0x20   :  { %1935 = shalt.err (!%p1932_p0)
}
  0x21   :  { %48 = dma.hbm_to_vmem [thread:$0]  %s2312_s3, 1024, %s43_s27, [#allocation11], %s1964_s19, %s1964_s19, %s1965_s20  }
  0x22   :  { %1956 = dma.done.wait [#allocation8], 1024  }
  0x23   :  { %1957 = vsyncadd [#allocation8], 4294966272 }
  0x24   :  { %1958 = dma.done.wait [#allocation11], 2048  }
  0x25   :  { %1959 = vsyncadd [#allocation11], 4294965248  ;;  %vm79_vm0 = vcmask 261120   ;;  %v1967_v0 = vmov 0.0   ;;  %vm1968_vm1 = vmmov 0   ;;  %v96_v1 = vld [vmem:[#allocation10] sm:$0xff] }
  0x26   :  { %1736 = vmatprep.subr.mxu0 %v1967_v0  ;;  %80 = vst.msk [vmem:[#allocation4] sm:$0xff] %vm79_vm0, %v1967_v0  ;;  %81 = vst.msk [vmem:[#allocation4 + $0x8] sm:$0xff] %vm79_vm0, %v1967_v0  ;;  %1741 = vmatprep.subr.mxu1 %v1967_v0  ;;  %v97_v2 = vld [vmem:[#allocation10 + $0x8] sm:$0xff]  ;;  %v88_v3 = vld [vmem:[#allocation7] sm:$0xff]  ;;  %vm62_vm2 = vcmask 7168   ;;  %v1969_v17 = vmov -inf  }
  0x27   :  { %82 = vst.msk [vmem:[#allocation4 + $0x10] sm:$0xff] %vm79_vm0, %v1967_v0  ;;  %83 = vst.msk [vmem:[#allocation4 + $0x18] sm:$0xff] %vm79_vm0, %v1967_v0  ;;  %1738 = vmatprep.mubr.msk.f32.mxu0 %vm1968_vm1, %v1967_v0  ;;  %1743 = vmatprep.mubr.msk.f32.mxu1 %vm1968_vm1, %v1967_v0  ;;  %v89_v4 = vld [vmem:[#allocation7 + $0x8] sm:$0xff]  ;;  %v98_v5 = vld [vmem:[#allocation10 + $0x10] sm:$0xff]  ;;  %vm729_vm3 = vcmask 64512   ;;  %v1970_v49 = vmov 0  }
  0x28   :  { %84 = vst.msk [vmem:[#allocation4 + $0x20] sm:$0xff] %vm79_vm0, %v1967_v0  ;;  %85 = vst.msk [vmem:[#allocation4 + $0x28] sm:$0xff] %vm79_vm0, %v1967_v0  ;;  %1737 = vmatpush3.xpose.msk.msra.mxu0 %vm79_vm0, %v96_v1  ;;  %1742 = vmatpush3.xpose.msk.msra.mxu1 %vm79_vm0, %v97_v2  ;;  %v99_v6 = vld [vmem:[#allocation10 + $0x18] sm:$0xff]  ;;  %v90_v7 = vld [vmem:[#allocation7 + $0x10] sm:$0xff]  ;;  %s1971_s1 = smov [#allocation13]  }
  0x29   :  { %86 = vst.msk [vmem:[#allocation4 + $0x30] sm:$0xff] %vm79_vm0, %v1967_v0  ;;  %87 = vst.msk [vmem:[#allocation4 + $0x38] sm:$0xff] %vm79_vm0, %v1967_v0  ;;  %1746 = vmatprep.subr.mxu0 %v1967_v0  ;;  %1751 = vmatprep.subr.mxu1 %v1967_v0  ;;  %v91_v8 = vld [vmem:[#allocation7 + $0x18] sm:$0xff]  ;;  %v100_v9 = vld [vmem:[#allocation10 + $0x20] sm:$0xff]  ;;  %s1667_s3 = sshll.u32 %s1971_s1, 4  ;;  %s1668_s3 = int_to_ptr.vmem [resolvable:$true] %s1667_s3 }
  0x2a   :  { %v101_v10 = vld [vmem:[#allocation10 + $0x28] sm:$0xff]  ;;  %v92_v11 = vld [vmem:[#allocation7 + $0x20] sm:$0xff]  ;;  %v102_v13 = vld [vmem:[#allocation10 + $0x30] sm:$0xff]  ;;  %63 = vst.msk [vmem:[#allocation2] sm:$0xff] %vm62_vm2, %v1969_v17  ;;  %1826 = vset.pattern.permute.xlu0 %v1970_v49  ;;  %1827 = vset.pattern.permute.xlu1 %v1970_v49  ;;  %s1936_s30 = scalar_lea.vmem %s1668_s3, 1024  ;;  %p1941_p2 = scmp.lt.s32.totalorder %s1668_s3, %s1668_s3 }
  0x2b   :  { %1739 = vmatmul.mubr.msk.f32.vlgmr.msra.gmra.mxu0 %vm79_vm0, %v88_v3  ;;  %1744 = vmatmul.mubr.msk.f32.vlgmr.msra.gmra.mxu1 %vm79_vm0, %v89_v4  ;;  %v93_v12 = vld [vmem:[#allocation7 + $0x28] sm:$0xff]  ;;  %v103_v14 = vld [vmem:[#allocation10 + $0x38] sm:$0xff]  ;;  %v94_v15 = vld [vmem:[#allocation7 + $0x30] sm:$0xff]  ;;  %64 = vst.msk [vmem:[#allocation2 + $0x8] sm:$0xff] %vm62_vm2, %v1969_v17  ;;  %p1937_p1 = scmp.ne.s32.totalorder %s1668_s3, %s1936_s30  ;;  %p1942_p3 = scmp.lt.s32.totalorder %s1936_s30, %s1936_s30 }
  0x2c   :  { %1747 = vmatpush3.xpose.msk.msra.mxu0 %vm79_vm0, %v98_v5  ;;  %1748 = vmatprep.mubr.msk.f32.mxu0 %vm1968_vm1, %v1967_v0  ;;  %v95_v16 = vld [vmem:[#allocation7 + $0x38] sm:$0xff]  ;;  %65 = vst.msk [vmem:[#allocation2 + $0x10] sm:$0xff] %vm62_vm2, %v1969_v17  ;;  %66 = vst.msk [vmem:[#allocation2 + $0x18] sm:$0xff] %vm62_vm2, %v1969_v17 }
  0x2d   :  { %1752 = vmatpush3.xpose.msk.msra.mxu1 %vm79_vm0, %v99_v6  ;;  %1753 = vmatprep.mubr.msk.f32.mxu1 %vm1968_vm1, %v1967_v0  ;;  %67 = vst.msk [vmem:[#allocation2 + $0x20] sm:$0xff] %vm62_vm2, %v1969_v17  ;;  %68 = vst.msk [vmem:[#allocation2 + $0x28] sm:$0xff] %vm62_vm2, %v1969_v17  ;;  %p1943_p4 = por %p1942_p3, %p1941_p2 }
  0x2e   :  { %1756 = vmatprep.subr.mxu0 %v1967_v0  ;;  %1761 = vmatprep.subr.mxu1 %v1967_v0  ;;  %69 = vst.msk [vmem:[#allocation2 + $0x30] sm:$0xff] %vm62_vm2, %v1969_v17  ;;  %70 = vst.msk [vmem:[#allocation2 + $0x38] sm:$0xff] %vm62_vm2, %v1969_v17  ;;  %v915_v17 = vld [vmem:[#allocation12] sm:$0xff] }
  0x2f   :  { %1749 = vmatmul.mubr.msk.f32.vlgmr.msra.gmra.mxu0 %vm79_vm0, %v90_v7  ;;  %71 = vst.msk [vmem:[#allocation3] sm:$0xff] %vm62_vm2, %v1967_v0  ;;  %72 = vst.msk [vmem:[#allocation3 + $0x8] sm:$0xff] %vm62_vm2, %v1967_v0  ;;  %p1944_p5 = pnand %p1943_p4, %p1937_p1 }
  0x30   :  { %1754 = vmatmul.mubr.msk.f32.vlgmr.msra.gmra.mxu1 %vm79_vm0, %v91_v8  ;;  %1757 = vmatpush3.xpose.msk.msra.mxu0 %vm79_vm0, %v100_v9  ;;  %73 = vst.msk [vmem:[#allocation3 + $0x10] sm:$0xff] %vm62_vm2, %v1967_v0  ;;  %74 = vst.msk [vmem:[#allocation3 + $0x18] sm:$0xff] %vm62_vm2, %v1967_v0 }
  0x31   :  { %1758 = vmatprep.mubr.msk.f32.mxu0 %vm1968_vm1, %v1967_v0  ;;  %1762 = vmatpush3.xpose.msk.msra.mxu1 %vm79_vm0, %v101_v10  ;;  %75 = vst.msk [vmem:[#allocation3 + $0x20] sm:$0xff] %vm62_vm2, %v1967_v0  ;;  %76 = vst.msk [vmem:[#allocation3 + $0x28] sm:$0xff] %vm62_vm2, %v1967_v0  ;;  %v2133_v51 = vld [vmem:[#allocation2] sm:$0xff] }
  0x32   :  { %1763 = vmatprep.mubr.msk.f32.mxu1 %vm1968_vm1, %v1967_v0  ;;  %1766 = vmatprep.subr.mxu0 %v1967_v0  ;;  %77 = vst.msk [vmem:[#allocation3 + $0x30] sm:$0xff] %vm62_vm2, %v1967_v0  ;;  %78 = vst.msk [vmem:[#allocation3 + $0x38] sm:$0xff] %vm62_vm2, %v1967_v0  ;;  %v2138_v54 = vld [vmem:[#allocation2 + $0x8] sm:$0xff] }
  0x33   :  { %1759 = vmatmul.mubr.msk.f32.vlgmr.msra.gmra.mxu0 %vm79_vm0, %v92_v11  ;;  %1771 = vmatprep.subr.mxu1 %v1967_v0  ;;  %v2140_v55 = vld [vmem:[#allocation2 + $0x10] sm:$0xff]  ;;  %v2153_v61 = vld [vmem:[#allocation2 + $0x18] sm:$0xff] }
  0x34   :  { %1764 = vmatmul.mubr.msk.f32.vlgmr.msra.gmra.mxu1 %vm79_vm0, %v93_v12  ;;  %1767 = vmatpush3.xpose.msk.msra.mxu0 %vm79_vm0, %v102_v13  ;;  %v2155_v62 = vld [vmem:[#allocation2 + $0x20] sm:$0xff]  ;;  %v2172_v6 = vld [vmem:[#allocation2 + $0x28] sm:$0xff] }
  0x35   :  { %1768 = vmatprep.mubr.msk.f32.mxu0 %vm1968_vm1, %v1967_v0  ;;  %1772 = vmatpush3.xpose.msk.msra.mxu1 %vm79_vm0, %v103_v14  ;;  %v2174_v7 = vld [vmem:[#allocation2 + $0x30] sm:$0xff]  ;;  %v2191_v14 = vld [vmem:[#allocation2 + $0x38] sm:$0xff] }
  0x36   :  { %1773 = vmatprep.mubr.msk.f32.mxu1 %vm1968_vm1, %v1967_v0  ;;  %1776 = vmatprep.subr.mxu0 %v1967_v0 }
  0x37   :  { %1769 = vmatmul.mubr.msk.f32.vlgmr.msra.gmra.mxu0 %vm79_vm0, %v94_v15  ;;  %1781 = vmatprep.subr.mxu1 %v1967_v0 }
  0x38   :  { %1774 = vmatmul.mubr.msk.f32.vlgmr.msra.gmra.mxu1 %vm79_vm0, %v95_v16  ;;  %1778 = vmatprep.mubr.msk.f32.mxu0 %vm1968_vm1, %v1967_v0 }
  0x39   :  { %1783 = vmatprep.mubr.msk.f32.mxu1 %vm1968_vm1, %v1967_v0  ;;  %1777 = vmatpush3.msra.mxu0 %v915_v17 }
  0x3a   :  { %1786 = vmatprep.subr.mxu0 %v1967_v0 }
  0xeb   :  { %v177_v18 = vpop.f32.mrf.mxu0  ;;  %v253_v19 = vpop.f32.mrf.mxu1 }
  0xec   :  { %v2101_v20 = vmul.f32 0.17677669, %v177_v18  ;;  %v2103_v21 = vmul.f32 0.17677669, %v253_v19 }
  0xed   :  { %v1740_v22 = vpop.f32.mrf.mxu0  ;;  %v1745_v23 = vpop.f32.mrf.mxu1 }
  0xee   :  { %v730_v24 = vsel %vm729_vm3, %v2101_v20, -inf  ;;  %v733_v27 = vsel %vm729_vm3, %v2103_v21, -inf  ;;  %v916_v23 = vld [vmem:[#allocation12 + $0x8] sm:$0xff] }
  0xef   :  { %731 = vmax.xlane.f32.xlu0 %v730_v24  ;;  %v329_v25 = vpop.f32.mrf.mxu0  ;;  %1782 = vmatpush3.msra.mxu1 %v916_v23 }
  0xf0   :  { %v2107_v26 = vmul.f32 0.17677669, %v329_v25  ;;  %v405_v28 = vpop.f32.mrf.mxu1  ;;  %1791 = vmatprep.subr.mxu1 %v1967_v0 }
  0xf1   :  { %v1750_v29 = vpop.f32.mrf.mxu0  ;;  %v2111_v30 = vmul.f32 0.17677669, %v405_v28 }
  0xf2   :  { %v1755_v31 = vpop.f32.mrf.mxu1  ;;  %v736_v32 = vsel %vm729_vm3, %v2107_v26, -inf }
  0xf3   :  { %734 = vmax.xlane.f32.xlu0 %v733_v27  ;;  %737 = vmax.xlane.f32.xlu1 %v736_v32  ;;  %v481_v33 = vpop.f32.mrf.mxu0  ;;  %v739_v35 = vsel %vm729_vm3, %v2111_v30, -inf }
  0xf4   :  { %v2115_v34 = vmul.f32 0.17677669, %v481_v33  ;;  %v557_v36 = vpop.f32.mrf.mxu1 }
  0xf5   :  { %v1760_v37 = vpop.f32.mrf.mxu0  ;;  %v2119_v38 = vmul.f32 0.17677669, %v557_v36 }
  0xf6   :  { %v1765_v39 = vpop.f32.mrf.mxu1  ;;  %v742_v40 = vsel %vm729_vm3, %v2115_v34, -inf }
  0xf7   :  { %740 = vmax.xlane.f32.xlu1 %v739_v35  ;;  %743 = vmax.xlane.f32.xlu0 %v742_v40  ;;  %v633_v41 = vpop.f32.mrf.mxu0  ;;  %v745_v43 = vsel %vm729_vm3, %v2119_v38, -inf }
  0xf8   :  { %v2123_v42 = vmul.f32 0.17677669, %v633_v41  ;;  %v709_v44 = vpop.f32.mrf.mxu1  ;;  %v917_v41 = vld [vmem:[#allocation12 + $0x10] sm:$0xff] }
  0xf9   :  { %v1770_v45 = vpop.f32.mrf.mxu0  ;;  %v2127_v46 = vmul.f32 0.17677669, %v709_v44 }
  0xfa   :  { %v1775_v47 = vpop.f32.mrf.mxu1  ;;  %v748_v48 = vsel %vm729_vm3, %v2123_v42, -inf }
  0xfb   :  { %746 = vmax.xlane.f32.xlu1 %v745_v43  ;;  %749 = vmax.xlane.f32.xlu0 %v748_v48  ;;  %v751_v50 = vsel %vm729_vm3, %v2127_v46, -inf }
  0xff   :  { %752 = vmax.xlane.f32.xlu1 %v751_v50 }
 0x178   :  { %v732_v52 = vpop.xlane.xlu0 %731 }
 0x179   :  { %v2136_v53 = vmax.f32 %v2133_v51, %v732_v52 }
 0x17b   :  { %v762_v56 = vsub.f32 %v2133_v51, %v2136_v53  ;;  %907 = vst.msk [vmem:[#allocation2] sm:$0xff] %vm62_vm2, %v2136_v53  ;;  %788 = vperm.xlu0 %1826, %v2136_v53  }
 0x17c   :  { %v735_v57 = vpop.xlane.xlu0 %734  ;;  %v738_v58 = vpop.xlane.xlu1 %737 }
 0x17d   :  { %v2148_v59 = vmax.f32 %v2138_v54, %v735_v57  ;;  %v2151_v60 = vmax.f32 %v2140_v55, %v738_v58 }
 0x17f   :  { %v763_v63 = vsub.f32 %v2138_v54, %v2148_v59  ;;  %908 = vst.msk [vmem:[#allocation2 + $0x8] sm:$0xff] %vm62_vm2, %v2148_v59  ;;  %793 = vperm.xlu1 %1827, %v2148_v59   ;;  %v764_v1 = vsub.f32 %v2140_v55, %v2151_v60  ;;  %909 = vst.msk [vmem:[#allocation2 + $0x10] sm:$0xff] %vm62_vm2, %v2151_v60 }
 0x180   :  { %v741_v2 = vpop.xlane.xlu1 %740  ;;  %v744_v3 = vpop.xlane.xlu0 %743 }
 0x181   :  { %v2167_v4 = vmax.f32 %v2153_v61, %v741_v2  ;;  %v2170_v5 = vmax.f32 %v2155_v62, %v744_v3 }
 0x183   :  { %798 = vperm.xlu1 %1827, %v2151_v60   ;;  %v765_v8 = vsub.f32 %v2153_v61, %v2167_v4  ;;  %910 = vst.msk [vmem:[#allocation2 + $0x18] sm:$0xff] %vm62_vm2, %v2167_v4  ;;  %v766_v9 = vsub.f32 %v2155_v62, %v2170_v5  ;;  %911 = vst.msk [vmem:[#allocation2 + $0x20] sm:$0xff] %vm62_vm2, %v2170_v5 }
 0x184   :  { %v747_v10 = vpop.xlane.xlu1 %746  ;;  %v750_v11 = vpop.xlane.xlu0 %749 }
 0x185   :  { %v2186_v12 = vmax.f32 %v2172_v6, %v747_v10  ;;  %v2189_v13 = vmax.f32 %v2174_v7, %v750_v11  ;;  %v776_v54 = vmul.f32 1.442695, %v765_v8  ;;  %v778_v59 = vmul.f32 1.442695, %v766_v9  ;;  %v851_v9 = vld [vmem:[#allocation3 + $0x8] sm:$0xff] }
 0x187   :  { %803 = vperm.xlu1 %1827, %v2167_v4   ;;  %v767_v15 = vsub.f32 %v2172_v6, %v2186_v12  ;;  %912 = vst.msk [vmem:[#allocation2 + $0x28] sm:$0xff] %vm62_vm2, %v2186_v12  ;;  %v768_v16 = vsub.f32 %v2174_v7, %v2189_v13  ;;  %913 = vst.msk [vmem:[#allocation2 + $0x30] sm:$0xff] %vm62_vm2, %v2189_v13  ;;  %v850_v6 = vld [vmem:[#allocation3] sm:$0xff] }
 0x188   :  { %v753_v18 = vpop.xlane.xlu1 %752 }
 0x189   :  { %v2203_v19 = vmax.f32 %v2191_v14, %v753_v18  ;;  %v921_v18 = vld [vmem:[#allocation12 + $0x30] sm:$0xff]  ;;  %v780_v51 = vmul.f32 1.442695, %v767_v15  ;;  %v782_v53 = vmul.f32 1.442695, %v768_v16 }
 0x18a   :  { %v852_v15 = vld [vmem:[#allocation3 + $0x10] sm:$0xff] }
 0x18b   :  { %808 = vperm.xlu1 %1827, %v2170_v5   ;;  %v769_v22 = vsub.f32 %v2191_v14, %v2203_v19  ;;  %914 = vst.msk [vmem:[#allocation2 + $0x38] sm:$0xff] %vm62_vm2, %v2203_v19 }
 0x18d   :  { %v784_v55 = vmul.f32 1.442695, %v769_v22 }
 0x18f   :  { %813 = vperm.xlu1 %1827, %v2186_v12  }
 0x193   :  { %818 = vperm.xlu1 %1827, %v2189_v13  }
 0x197   :  { %823 = vperm.xlu1 %1827, %v2203_v19  }
 0x1f6   :  { %v789_v24 = vpop.permute.xlu0 %788 }
 0x1f7   :  { %v826_v25 = vsub.f32 %v2101_v20, %v789_v24  ;;  %v922_v24 = vld [vmem:[#allocation12 + $0x38] sm:$0xff] }
 0x1f9   :  { %v834_v27 = vmul.f32 1.442695, %v826_v25 }
 0x1fa   :  { %v794_v28 = vpop.permute.xlu1 %793 }
 0x1fb   :  { %1828 = vpow2.f32 %v834_v27  ;;  %v827_v29 = vsub.f32 %v2103_v21, %v794_v28 }
 0x1fd   :  { %v836_v31 = vmul.f32 1.442695, %v827_v29 }
 0x1fe   :  { %v799_v32 = vpop.permute.xlu1 %798 }
 0x1ff   :  { %1830 = vpow2.f32 %v836_v31  ;;  %v828_v33 = vsub.f32 %v2107_v26, %v799_v32  ;;  %v772_v32 = vmul.f32 1.442695, %v763_v63 }
 0x201   :  { %v838_v35 = vmul.f32 1.442695, %v828_v33 }
 0x202   :  { %v804_v36 = vpop.permute.xlu1 %803 }
 0x203   :  { %1832 = vpow2.f32 %v838_v35  ;;  %v829_v37 = vsub.f32 %v2111_v30, %v804_v36  ;;  %v918_v30 = vld [vmem:[#allocation12 + $0x18] sm:$0xff]  ;;  %v770_v35 = vmul.f32 1.442695, %v762_v56 }
 0x204   :  { %v853_v36 = vld [vmem:[#allocation3 + $0x18] sm:$0xff] }
 0x205   :  { %v840_v39 = vmul.f32 1.442695, %v829_v37 }
 0x206   :  { %v809_v40 = vpop.permute.xlu1 %808 }
 0x207   :  { %1834 = vpow2.f32 %v840_v39  ;;  %v830_v20 = vsub.f32 %v2115_v34, %v809_v40 }
 0x208   :  { %v1829_v43 = vpop.eup %1828 }
 0x209   :  { %v842_v44 = vmul.f32 1.442695, %v830_v20  ;;  %1779 = vmatmul.mubr.msk.f32.vlgmr.msra.gmra.mxu0 %vm729_vm3, %v1829_v43  ;;  %v866_v21 = vsel %vm729_vm3, %v1829_v43, 0.0 }
 0x20a   :  { %v814_v45 = vpop.permute.xlu1 %813  ;;  %867 = vadd.xlane.f32.xlu1 %v866_v21  ;;  %1787 = vmatpush3.msra.mxu0 %v917_v41  ;;  %v854_v41 = vld [vmem:[#allocation3 + $0x20] sm:$0xff] }
 0x20b   :  { %1836 = vpow2.f32 %v842_v44  ;;  %v831_v26 = vsub.f32 %v2119_v38, %v814_v45  ;;  %1788 = vmatprep.mubr.msk.f32.mxu0 %vm1968_vm1, %v1967_v0  ;;  %1796 = vmatprep.subr.mxu0 %v1967_v0  ;;  %v919_v38 = vld [vmem:[#allocation12 + $0x20] sm:$0xff] }
 0x20c   :  { %v1831_v34 = vpop.eup %1830 }
 0x20d   :  { %v844_v47 = vmul.f32 1.442695, %v831_v26  ;;  %1784 = vmatmul.mubr.msk.f32.vlgmr.msra.gmra.mxu1 %vm729_vm3, %v1831_v34  ;;  %v869_v48 = vsel %vm729_vm3, %v1831_v34, 0.0  ;;  %v855_v26 = vld [vmem:[#allocation3 + $0x28] sm:$0xff] }
 0x20e   :  { %v819_v49 = vpop.permute.xlu1 %818  ;;  %870 = vadd.xlane.f32.xlu0 %v869_v48  ;;  %1792 = vmatpush3.msra.mxu1 %v918_v30 }
 0x20f   :  { %1838 = vpow2.f32 %v844_v47  ;;  %v832_v50 = vsub.f32 %v2123_v42, %v819_v49  ;;  %1793 = vmatprep.mubr.msk.f32.mxu1 %vm1968_vm1, %v1967_v0  ;;  %1801 = vmatprep.subr.mxu1 %v1967_v0  ;;  %v920_v42 = vld [vmem:[#allocation12 + $0x28] sm:$0xff]  ;;  %v856_v49 = vld [vmem:[#allocation3 + $0x30] sm:$0xff] }
 0x210   :  { %v1833_v52 = vpop.eup %1832 }
 0x211   :  { %v846_v57 = vmul.f32 1.442695, %v832_v50  ;;  %1789 = vmatmul.mubr.msk.f32.vlgmr.msra.gmra.mxu0 %vm729_vm3, %v1833_v52  ;;  %v872_v58 = vsel %vm729_vm3, %v1833_v52, 0.0 }
 0x212   :  { %v824_v2 = vpop.permute.xlu1 %823  ;;  %873 = vadd.xlane.f32.xlu0 %v872_v58  ;;  %1797 = vmatpush3.msra.mxu0 %v919_v38 }
 0x213   :  { %1840 = vpow2.f32 %v846_v57  ;;  %v833_v3 = vsub.f32 %v2127_v46, %v824_v2  ;;  %1798 = vmatprep.mubr.msk.f32.mxu0 %vm1968_vm1, %v1967_v0  ;;  %1806 = vmatprep.subr.mxu0 %v1967_v0  ;;  %v857_v2 = vld [vmem:[#allocation3 + $0x38] sm:$0xff] }
 0x214   :  { %v1835_v10 = vpop.eup %1834 }
 0x215   :  { %v848_v11 = vmul.f32 1.442695, %v833_v3  ;;  %1794 = vmatmul.mubr.msk.f32.vlgmr.msra.gmra.mxu1 %vm729_vm3, %v1835_v10  ;;  %v875_v17 = vsel %vm729_vm3, %v1835_v10, 0.0 }
 0x216   :  { %876 = vadd.xlane.f32.xlu1 %v875_v17  ;;  %1802 = vmatpush3.msra.mxu1 %v920_v42 }
 0x217   :  { %1842 = vpow2.f32 %v848_v11  ;;  %1803 = vmatprep.mubr.msk.f32.mxu1 %vm1968_vm1, %v1967_v0  ;;  %1811 = vmatprep.subr.mxu1 %v1967_v0 }
 0x218   :  { %v1837_v46 = vpop.eup %1836  ;;  %1844 = vpow2.f32 %v772_v32  ;;  %v1507_v32 = vld [vmem:[#allocation4] sm:$0xff] }
 0x219   :  { %1799 = vmatmul.mubr.msk.f32.vlgmr.msra.gmra.mxu0 %vm729_vm3, %v1837_v46  ;;  %v878_v23 = vsel %vm729_vm3, %v1837_v46, 0.0  ;;  %1846 = vpow2.f32 %v770_v35 }
 0x21a   :  { %879 = vadd.xlane.f32.xlu0 %v878_v23  ;;  %1807 = vmatpush3.msra.mxu0 %v921_v18 }
 0x21b   :  { %1808 = vmatprep.mubr.msk.f32.mxu0 %vm1968_vm1, %v1967_v0 }
 0x21c   :  { %v1839_v25 = vpop.eup %1838 }
 0x21d   :  { %1804 = vmatmul.mubr.msk.f32.vlgmr.msra.gmra.mxu1 %vm729_vm3, %v1839_v25  ;;  %v881_v27 = vsel %vm729_vm3, %v1839_v25, 0.0 }
 0x21e   :  { %882 = vadd.xlane.f32.xlu1 %v881_v27  ;;  %1812 = vmatpush3.msra.mxu1 %v922_v24 }
 0x21f   :  { %1813 = vmatprep.mubr.msk.f32.mxu1 %vm1968_vm1, %v1967_v0  ;;  %v774_v0 = vmul.f32 1.442695, %v764_v1 }
 0x220   :  { %v1841_v28 = vpop.eup %1840 }
 0x221   :  { %1809 = vmatmul.mubr.msk.f32.vlgmr.msra.gmra.mxu0 %vm729_vm3, %v1841_v28  ;;  %v884_v29 = vsel %vm729_vm3, %v1841_v28, 0.0  ;;  %1848 = vpow2.f32 %v774_v0 }
 0x222   :  { %885 = vadd.xlane.f32.xlu0 %v884_v29  ;;  %1850 = vpow2.f32 %v776_v54 }
 0x223   :  { %1852 = vpow2.f32 %v778_v59  ;;  %v1508_v59 = vld [vmem:[#allocation4 + $0x8] sm:$0xff] }
 0x224   :  { %v1843_v31 = vpop.eup %1842  ;;  %1854 = vpow2.f32 %v780_v51 }
 0x225   :  { %1814 = vmatmul.mubr.msk.f32.vlgmr.msra.gmra.mxu1 %vm729_vm3, %v1843_v31  ;;  %v887_v33 = vsel %vm729_vm3, %v1843_v31, 0.0  ;;  %1856 = vpow2.f32 %v782_v53  ;;  %v1845_v56 = vpop.eup %1844 }
 0x226   :  { %888 = vadd.xlane.f32.xlu1 %v887_v33  ;;  %1858 = vpow2.f32 %v784_v55  ;;  %v1847_v60 = vpop.eup %1846  ;;  %v859_v13 = vmul.f32 %v1845_v56, %v851_v9 }
 0x227   :  { %v858_v7 = vmul.f32 %v1847_v60, %v850_v6 }
 0x22e   :  { %v1849_v61 = vpop.eup %1848 }
 0x22f   :  { %v1851_v62 = vpop.eup %1850  ;;  %v860_v19 = vmul.f32 %v1849_v61, %v852_v15 }
 0x230   :  { %v1853_v63 = vpop.eup %1852  ;;  %v861_v40 = vmul.f32 %v1851_v62, %v853_v36  ;;  %v1512_v36 = vld [vmem:[#allocation4 + $0x28] sm:$0xff] }
 0x231   :  { %v1855_v1 = vpop.eup %1854  ;;  %v862_v21 = vmul.f32 %v1853_v63, %v854_v41 }
 0x232   :  { %v1857_v4 = vpop.eup %1856  ;;  %v863_v47 = vmul.f32 %v1855_v1, %v855_v26 }
 0x233   :  { %v1859_v5 = vpop.eup %1858  ;;  %v864_v52 = vmul.f32 %v1857_v4, %v856_v49 }
 0x234   :  { %v865_v10 = vmul.f32 %v1859_v5, %v857_v2 }
 0x237   :  { %1522 = vperm.xlu1 %1827, %v1845_v56  }
 0x238   :  { %1517 = vperm.xlu0 %1826, %v1847_v60   ;;  %v1509_v60 = vld [vmem:[#allocation4 + $0x10] sm:$0xff] }
 0x23b   :  { %1527 = vperm.xlu1 %1827, %v1849_v61  }
 0x23c   :  { %1532 = vperm.xlu0 %1826, %v1851_v62  }
 0x23f   :  { %1537 = vperm.xlu1 %1827, %v1853_v63  }
 0x240   :  { %1542 = vperm.xlu0 %1826, %v1855_v1  }
 0x243   :  { %1547 = vperm.xlu1 %1827, %v1857_v4  }
 0x244   :  { %1552 = vperm.xlu0 %1826, %v1859_v5   ;;  %v1510_v5 = vld [vmem:[#allocation4 + $0x18] sm:$0xff] }
 0x293   :  { %v868_v8 = vpop.xlane.xlu1 %867 }
 0x294   :  { %v890_v12 = vadd.f32 %v868_v8, %v858_v7 }
 0x296   :  { %899 = vst.msk [vmem:[#allocation3] sm:$0xff] %vm62_vm2, %v890_v12 }
 0x297   :  { %v871_v14 = vpop.xlane.xlu0 %870 }
 0x298   :  { %v891_v16 = vadd.f32 %v871_v14, %v859_v13  ;;  %v1511_v13 = vld [vmem:[#allocation4 + $0x20] sm:$0xff] }
 0x29a   :  { %900 = vst.msk [vmem:[#allocation3 + $0x8] sm:$0xff] %vm62_vm2, %v891_v16 }
 0x29b   :  { %v874_v22 = vpop.xlane.xlu0 %873 }
 0x29c   :  { %v892_v37 = vadd.f32 %v874_v22, %v860_v19 }
 0x29d   :  { %v1582_v39 = vld [vmem:[#allocation3] sm:$0xff] }
 0x29e   :  { %901 = vst.msk [vmem:[#allocation3 + $0x10] sm:$0xff] %vm62_vm2, %v892_v37  ;;  %1860 = vrcp.f32 %v1582_v39 }
 0x29f   :  { %v877_v20 = vpop.xlane.xlu1 %876 }
 0x2a0   :  { %v893_v43 = vadd.f32 %v877_v20, %v861_v40 }
 0x2a1   :  { %v1583_v44 = vld [vmem:[#allocation3 + $0x8] sm:$0xff] }
 0x2a2   :  { %902 = vst.msk [vmem:[#allocation3 + $0x18] sm:$0xff] %vm62_vm2, %v893_v43  ;;  %1862 = vrcp.f32 %v1583_v44  ;;  %v1513_v43 = vld [vmem:[#allocation4 + $0x30] sm:$0xff] }
 0x2a3   :  { %v880_v45 = vpop.xlane.xlu0 %879 }
 0x2a4   :  { %v894_v30 = vadd.f32 %v880_v45, %v862_v21 }
 0x2a5   :  { %v1584_v34 = vld [vmem:[#allocation3 + $0x10] sm:$0xff] }
 0x2a6   :  { %903 = vst.msk [vmem:[#allocation3 + $0x20] sm:$0xff] %vm62_vm2, %v894_v30  ;;  %1864 = vrcp.f32 %v1584_v34  ;;  %v1514_v34 = vld [vmem:[#allocation4 + $0x38] sm:$0xff] }
 0x2a7   :  { %v883_v48 = vpop.xlane.xlu1 %882 }
 0x2a8   :  { %v895_v50 = vadd.f32 %v883_v48, %v863_v47 }
 0x2a9   :  { %v1585_v38 = vld [vmem:[#allocation3 + $0x18] sm:$0xff] }
 0x2aa   :  { %904 = vst.msk [vmem:[#allocation3 + $0x28] sm:$0xff] %vm62_vm2, %v895_v50  ;;  %1866 = vrcp.f32 %v1585_v38 }
 0x2ab   :  { %v1861_v57 = vpop.eup %1860  ;;  %v886_v58 = vpop.xlane.xlu0 %885 }
 0x2ac   :  { %v896_v3 = vadd.f32 %v886_v58, %v864_v52  ;;  %1608 = vperm.xlu1 %1827, %v1861_v57  }
 0x2ad   :  { %v1586_v42 = vld [vmem:[#allocation3 + $0x20] sm:$0xff] }
 0x2ae   :  { %905 = vst.msk [vmem:[#allocation3 + $0x30] sm:$0xff] %vm62_vm2, %v896_v3  ;;  %1868 = vrcp.f32 %v1586_v42 }
 0x2af   :  { %v1863_v11 = vpop.eup %1862  ;;  %v889_v17 = vpop.xlane.xlu1 %888 }
 0x2b0   :  { %v897_v18 = vadd.f32 %v889_v17, %v865_v10  ;;  %1613 = vperm.xlu0 %1826, %v1863_v11  }
 0x2b1   :  { %v1587_v46 = vld [vmem:[#allocation3 + $0x28] sm:$0xff] }
 0x2b2   :  { %906 = vst.msk [vmem:[#allocation3 + $0x38] sm:$0xff] %vm62_vm2, %v897_v18  ;;  %1870 = vrcp.f32 %v1587_v46 }
 0x2b3   :  { %v1865_v23 = vpop.eup %1864  ;;  %v1518_v33 = vpop.permute.xlu0 %1517 }
 0x2b4   :  { %1618 = vperm.xlu1 %1827, %v1865_v23   ;;  %v1523_v0 = vpop.permute.xlu1 %1522  ;;  %v1555_v54 = vmul.f32 %v1518_v33, %v1507_v32 }
 0x2b5   :  { %v1588_v24 = vld [vmem:[#allocation3 + $0x30] sm:$0xff]  ;;  %v1556_v56 = vmul.f32 %v1523_v0, %v1508_v59 }
 0x2b6   :  { %1872 = vrcp.f32 %v1588_v24 }
 0x2b7   :  { %v1867_v25 = vpop.eup %1866  ;;  %v1533_v6 = vpop.permute.xlu0 %1532 }
 0x2b8   :  { %1623 = vperm.xlu0 %1826, %v1867_v25   ;;  %v1528_v61 = vpop.permute.xlu1 %1527  ;;  %v1558_v12 = vmul.f32 %v1533_v6, %v1510_v5 }
 0x2b9   :  { %v1589_v27 = vld [vmem:[#allocation3 + $0x38] sm:$0xff]  ;;  %v1557_v4 = vmul.f32 %v1528_v61, %v1509_v60 }
 0x2ba   :  { %1874 = vrcp.f32 %v1589_v27 }
 0x2bb   :  { %v1869_v28 = vpop.eup %1868  ;;  %v1543_v37 = vpop.permute.xlu0 %1542 }
 0x2bc   :  { %1628 = vperm.xlu1 %1827, %v1869_v28   ;;  %v1538_v14 = vpop.permute.xlu1 %1537  ;;  %v1560_v41 = vmul.f32 %v1543_v37, %v1512_v36 }
 0x2bd   :  { %v1559_v22 = vmul.f32 %v1538_v14, %v1511_v13 }
 0x2bf   :  { %v1871_v29 = vpop.eup %1870  ;;  %v1553_v47 = vpop.permute.xlu0 %1552 }
 0x2c0   :  { %1633 = vperm.xlu0 %1826, %v1871_v29   ;;  %v1548_v44 = vpop.permute.xlu1 %1547  ;;  %v1562_v38 = vmul.f32 %v1553_v47, %v1514_v34 }
 0x2c1   :  { %v1561_v30 = vmul.f32 %v1548_v44, %v1513_v43 }
 0x2c3   :  { %v1873_v31 = vpop.eup %1872 }
 0x2c4   :  { %1638 = vperm.xlu1 %1827, %v1873_v31  }
 0x2c7   :  { %v1875_v35 = vpop.eup %1874 }
 0x2c8   :  { %1643 = vperm.xlu0 %1826, %v1875_v35  }
 0x2c9   :  { %v992_v51 = vpop.f32.mrf.mxu0 }
 0x2ca   :  { %v1563_v53 = vadd.f32 %v1555_v54, %v992_v51 }
 0x2cb   :  { %v1780_v55 = vpop.f32.mrf.mxu0 }
 0x2cc   :  { %1571 = vst.msk [vmem:[#allocation4] sm:$0xff] %vm79_vm0, %v1563_v53 }
 0x2cd   :  { %v1065_v62 = vpop.f32.mrf.mxu1 }
 0x2ce   :  { %v1564_v63 = vadd.f32 %v1556_v56, %v1065_v62 }
 0x2cf   :  { %v1785_v1 = vpop.f32.mrf.mxu1 }
 0x2d0   :  { %1572 = vst.msk [vmem:[#allocation4 + $0x8] sm:$0xff] %vm79_vm0, %v1564_v63 }
 0x2d1   :  { %v1138_v7 = vpop.f32.mrf.mxu0 }
 0x2d2   :  { %v1565_v8 = vadd.f32 %v1557_v4, %v1138_v7 }
 0x2d3   :  { %v1790_v9 = vpop.f32.mrf.mxu0  ;;  %v1598_v2 = vld [vmem:[#allocation4] sm:$0xff] }
 0x2d4   :  { %1573 = vst.msk [vmem:[#allocation4 + $0x10] sm:$0xff] %vm79_vm0, %v1565_v8 }
 0x2d5   :  { %v1211_v15 = vpop.f32.mrf.mxu1 }
 0x2d6   :  { %v1566_v16 = vadd.f32 %v1558_v12, %v1211_v15 }
 0x2d7   :  { %v1795_v19 = vpop.f32.mrf.mxu1  ;;  %v1599_v10 = vld [vmem:[#allocation4 + $0x8] sm:$0xff] }
 0x2d8   :  { %1574 = vst.msk [vmem:[#allocation4 + $0x18] sm:$0xff] %vm79_vm0, %v1566_v16 }
 0x2d9   :  { %v1284_v39 = vpop.f32.mrf.mxu0 }
 0x2da   :  { %v1567_v40 = vadd.f32 %v1559_v22, %v1284_v39 }
 0x2db   :  { %v1800_v20 = vpop.f32.mrf.mxu0  ;;  %v1600_v18 = vld [vmem:[#allocation4 + $0x10] sm:$0xff] }
 0x2dc   :  { %1575 = vst.msk [vmem:[#allocation4 + $0x20] sm:$0xff] %vm79_vm0, %v1567_v40 }
 0x2dd   :  { %v1357_v21 = vpop.f32.mrf.mxu1 }
 0x2de   :  { %v1568_v45 = vadd.f32 %v1560_v41, %v1357_v21 }
 0x2df   :  { %v1805_v26 = vpop.f32.mrf.mxu1  ;;  %v1601_v24 = vld [vmem:[#allocation4 + $0x18] sm:$0xff] }
 0x2e0   :  { %1576 = vst.msk [vmem:[#allocation4 + $0x28] sm:$0xff] %vm79_vm0, %v1568_v45 }
 0x2e1   :  { %v1430_v48 = vpop.f32.mrf.mxu0 }
 0x2e2   :  { %v1569_v49 = vadd.f32 %v1561_v30, %v1430_v48 }
 0x2e3   :  { %v1810_v50 = vpop.f32.mrf.mxu0  ;;  %v1602_v28 = vld [vmem:[#allocation4 + $0x20] sm:$0xff] }
 0x2e4   :  { %1577 = vst.msk [vmem:[#allocation4 + $0x30] sm:$0xff] %vm79_vm0, %v1569_v49 }
 0x2e5   :  { %v1503_v52 = vpop.f32.mrf.mxu1 }
 0x2e6   :  { %v1570_v57 = vadd.f32 %v1562_v38, %v1503_v52 }
 0x2e7   :  { %v1815_v58 = vpop.f32.mrf.mxu1  ;;  %v1603_v32 = vld [vmem:[#allocation4 + $0x28] sm:$0xff] }
 0x2e8   :  { %1578 = vst.msk [vmem:[#allocation4 + $0x38] sm:$0xff] %vm79_vm0, %v1570_v57 }
 0x2eb   :  { %v1604_v0 = vld [vmem:[#allocation4 + $0x30] sm:$0xff] }
 0x2ef   :  { %v1605_v51 = vld [vmem:[#allocation4 + $0x38] sm:$0xff] }
 0x327   :  { %v1609_v3 = vpop.permute.xlu1 %1608 }
 0x328   :  { %v1646_v42 = vmul.f32 %v1609_v3, %v1598_v2 }
 0x32a   :  { %1654 = vst.msk [vmem:[#allocation13] sm:$0xff] %vm79_vm0, %v1646_v42 }
 0x32b   :  { %v1614_v11 = vpop.permute.xlu0 %1613 }
 0x32c   :  { %v1647_v17 = vmul.f32 %v1614_v11, %v1599_v10 }
 0x32e   :  { %1655 = vst.msk [vmem:[#allocation13 + $0x8] sm:$0xff] %vm79_vm0, %v1647_v17 }
 0x32f   :  { %v1619_v46 = vpop.permute.xlu1 %1618 }
 0x330   :  { %v1648_v23 = vmul.f32 %v1619_v46, %v1600_v18 }
 0x332   :  { %1656 = vst.msk [vmem:[#allocation13 + $0x10] sm:$0xff] %vm79_vm0, %v1648_v23 }
 0x333   :  { %v1624_v25 = vpop.permute.xlu0 %1623 }
 0x334   :  { %v1649_v27 = vmul.f32 %v1624_v25, %v1601_v24 }
 0x336   :  { %1657 = vst.msk [vmem:[#allocation13 + $0x18] sm:$0xff] %vm79_vm0, %v1649_v27 }
 0x337   :  { %v1629_v29 = vpop.permute.xlu1 %1628 }
 0x338   :  { %v1650_v31 = vmul.f32 %v1629_v29, %v1602_v28 }
 0x33a   :  { %1658 = vst.msk [vmem:[#allocation13 + $0x20] sm:$0xff] %vm79_vm0, %v1650_v31 }
 0x33b   :  { %v1634_v33 = vpop.permute.xlu0 %1633 }
 0x33c   :  { %v1651_v35 = vmul.f32 %v1634_v33, %v1603_v32 }
 0x33e   :  { %1659 = vst.msk [vmem:[#allocation13 + $0x28] sm:$0xff] %vm79_vm0, %v1651_v35 }
 0x33f   :  { %v1639_v54 = vpop.permute.xlu1 %1638 }
 0x340   :  { %v1652_v59 = vmul.f32 %v1639_v54, %v1604_v0 }
 0x342   :  { %1660 = vst.msk [vmem:[#allocation13 + $0x30] sm:$0xff] %vm79_vm0, %v1652_v59 }
 0x343   :  { %v1644_v53 = vpop.permute.xlu0 %1643 }
 0x344   :  { %v1653_v55 = vmul.f32 %v1644_v53, %v1605_v51 }
 0x346   :  { %1661 = vst.msk [vmem:[#allocation13 + $0x38] sm:$0xff] %vm79_vm0, %v1653_v55 }
 0x347   :  { %1947 = shalt.err (!%p1944_p5)
}
 0x348   :  { %1673 = dma.vmem_to_hbm [thread:$0]  %s1668_s3, 1024, %s2313_s4, [#allocation9], %s1964_s19, %s1964_s19, %s1965_s20  }
 0x349   :  { %1960 = dma.done.wait [#allocation9], 1024  }
 0x34a   :  { %1961 = vsyncadd [#allocation9], 4294966272 }
 0x34b   :  { %1677 = vsyncpa [#allocation8], 1 }
 0x34c   :  { %1678 = vsyncpa [#allocation11], 1 }
 0x34d   :  { %1679 = vsyncpa [#allocation9], 1 }

</bundles_post_ra>
